<compile_context>
chip_gen: v5e
topology: v5e:2x2
jax: 0.10.0
libtpu: 0.0.40
codegen_flags: <defaults>
</compile_context>

<pallas_src>
import math
import functools

import jax
import jax.numpy as jnp
from jax import lax
from jax.experimental import pallas as pl
from jax.experimental.pallas import tpu as pltpu


# ---------------------------------------------------------------------------
# Parameter / buffer setup (plain JAX glue — mirrors nn.Module.__init__)
# ---------------------------------------------------------------------------
def make_pe_buffer(d_model: int, max_len: int = 5000, dtype=jnp.float32):
    position = jnp.arange(max_len, dtype=jnp.float32)[:, None]                  # (max_len, 1)
    div_term = jnp.exp(
        jnp.arange(0, d_model, 2, dtype=jnp.float32) * (-math.log(10000.0) / d_model)
    )                                                                           # (d_model/2,)
    pe = jnp.zeros((max_len, 1, d_model), dtype=jnp.float32)
    pe = pe.at[:, 0, 0::2].set(jnp.sin(position * div_term))
    pe = pe.at[:, 0, 1::2].set(jnp.cos(position * div_term))
    return pe.astype(dtype)


# ---------------------------------------------------------------------------
# Kernels
# ---------------------------------------------------------------------------
def pe_add_kernel(x_ref, pe_ref, o_ref):
    # x block (ts, B, D); pe block (ts, D) already in x.dtype.
    # Sublane broadcast of pe over batch — no materialized (ts, B*D) temp.
    o_ref[...] = x_ref[...] + pe_ref[...][:, None, :]


def _fmix32(h):
    # murmur3-style 32-bit finalizer (uint32, logical shifts).
    h = (h ^ (h >> 16)) * jnp.uint32(0x7FEB352D)
    h = (h ^ (h >> 15)) * jnp.uint32(0x846CA68B)
    return h ^ (h >> 16)


def pe_add_dropout_kernel(seed_ref, x_ref, pe_ref, o_ref, *,
                          keep_threshold: int, scale: float,
                          seq_tile: int, batch: int, d_model: int):
    y = x_ref[...] + pe_ref[...][:, None, :]                # stay in x dtype
    shape = y.shape                                         # (ts, B, D)

    # Global element id -> stateless per-(seed, element) dropout decision.
    row = lax.broadcasted_iota(jnp.int32, shape, 0) + pl.program_id(0) * seq_tile
    col = lax.broadcasted_iota(jnp.int32, shape, 1)
    lane = lax.broadcasted_iota(jnp.int32, shape, 2)
    eid = (row * batch + col) * d_model + lane

    seed = seed_ref[0].astype(jnp.uint32) * jnp.uint32(0x9E3779B9)
    bits = _fmix32(eid.astype(jnp.uint32) ^ seed)
    r = (bits >> 9).astype(jnp.int32)                       # 23 uniform bits, nonneg
    keep = r < jnp.int32(keep_threshold)                    # P(keep) ~= 1 - p

    o_ref[...] = jnp.where(keep,
                           y * jnp.asarray(scale, dtype=y.dtype),
                           jnp.zeros((), dtype=y.dtype))


# ---------------------------------------------------------------------------
# Tiling helpers
# ---------------------------------------------------------------------------
def _sublane_multiple(dtype) -> int:
    # Packed-sublane multiple: 8 for 4-byte, 16 for 2-byte, 32 for 1-byte dtypes.
    return {4: 8, 2: 16, 1: 32}.get(jnp.dtype(dtype).itemsize, 8)


def _round_up(v: int, m: int) -> int:
    return ((v + m - 1) // m) * m


# ---------------------------------------------------------------------------
# Wrapper
# ---------------------------------------------------------------------------
def positional_encoding(x, pe, *, dropout_p: float = 0.1, training: bool = False,
                        seed: int = 0, seq_tile: int | None = None,
                        block_target_bytes: int | None = None):
    """x: [seq_len, batch, d_model]; pe: [max_len, 1, d_model]."""
    S, B, D = x.shape
    max_len = pe.shape[0]
    assert S <= max_len, "sequence longer than positional-encoding buffer"

    if training and dropout_p >= 1.0:
        return jnp.zeros_like(x)

    use_dropout = training and dropout_p > 0.0

    # pe as a lane-dense [max_len, D] slab in x.dtype (cast once, wrapper-side).
    pe2 = pe.reshape(max_len, D).astype(x.dtype)

    itemsize = jnp.dtype(x.dtype).itemsize
    row_bytes = B * D * itemsize
    sublane = _sublane_multiple(x.dtype)

    if block_target_bytes is None:
        # ~4 MiB x-blocks for the pure add; ~2 MiB when the dropout path's
        # uint32 hash temporaries (4 B/elem) also live in VMEM.
        block_target_bytes = (2 << 20) if use_dropout else (4 << 20)

    if seq_tile is None:
        ts = block_target_bytes // max(row_bytes, 1)
    else:
        ts = int(seq_tile)
    ts = min(max(ts, 1), S)
    ts = _round_up(ts, sublane)          # keep pe/x blocks sublane-aligned
    grid = (pl.cdiv(S, ts),)

    x_spec = pl.BlockSpec((ts, B, D), lambda i, *_: (i, 0, 0))
    pe_spec = pl.BlockSpec((ts, D), lambda i, *_: (i, 0))
    o_spec = pl.BlockSpec((ts, B, D), lambda i, *_: (i, 0, 0))

    # VMEM budget: double-buffered x/out/pe blocks + dropout temporaries,
    # capped at 40 MiB (headroom under v7x's 64 MiB physical VMEM per TC).
    xb = ts * B * D * itemsize
    peb = ts * D * itemsize
    pipeline_bytes = 2 * (2 * xb + peb)
    temp_bytes = (ts * B * D * 4) * (3 if use_dropout else 1)
    vmem_limit = int(min(40 << 20, max(8 << 20, pipeline_bytes + temp_bytes + (2 << 20))))
    cparams = pltpu.CompilerParams(
        dimension_semantics=("parallel",),     # lets v7x shard steps over 2 TCs
        vmem_limit_bytes=vmem_limit,
    )

    if not use_dropout:
        return pl.pallas_call(
            pe_add_kernel,
            out_shape=jax.ShapeDtypeStruct((S, B, D), x.dtype),
            grid=grid,
            in_specs=[x_spec, pe_spec],
            out_specs=o_spec,
            compiler_params=cparams,
        )(x, pe2)

    # Training path: inverted dropout with a stateless in-kernel hash.
    keep_threshold = int(round((1.0 - float(dropout_p)) * (1 << 23)))
    scale = 1.0 / (1.0 - float(dropout_p))
    seed_arr = jnp.array([seed], dtype=jnp.int32)
    kernel = functools.partial(
        pe_add_dropout_kernel,
        keep_threshold=keep_threshold, scale=scale,
        seq_tile=ts, batch=B, d_model=D)
    return pl.pallas_call(
        kernel,
        out_shape=jax.ShapeDtypeStruct((S, B, D), x.dtype),
        grid_spec=pltpu.PrefetchScalarGridSpec(
            num_scalar_prefetch=1,
            grid=grid,
            in_specs=[x_spec, pe_spec],
            out_specs=o_spec),
        compiler_params=cparams,
    )(seed_arr, x, pe2)


# ---------------------------------------------------------------------------
# Demo / self-check
# ---------------------------------------------------------------------------
if __name__ == "__main__":
    d_model = 32
    max_len = 64
    seq_len = 8
    batch = 4
    p = 0.1

    key = jax.random.PRNGKey(0)
    x = jax.random.normal(key, (seq_len, batch, d_model), dtype=jnp.float32)
    pe = make_pe_buffer(d_model, max_len=max_len, dtype=jnp.float32)

    ref = x + pe[:seq_len]

    # Eval mode: dropout is identity -> exact match against pure-JAX reference.
    out_eval = positional_encoding(x, pe, dropout_p=p, training=False)
    out_eval = jax.block_until_ready(out_eval)
    assert out_eval.shape == x.shape and out_eval.dtype == x.dtype
    assert jnp.allclose(out_eval, ref, atol=1e-6, rtol=1e-6), "eval mismatch vs reference"

    # Training mode: check inverted-dropout invariants (kept values scaled, some drops).
    out_train = positional_encoding(x, pe, dropout_p=p, training=True, seed=123)
    out_train = jax.block_until_ready(out_train)
    assert out_train.shape == x.shape and out_train.dtype == x.dtype
    kept = out_train != 0.0
    scaled_ref = ref * (1.0 / (1.0 - p))
    err = jnp.where(kept, out_train - scaled_ref, 0.0)
    assert jnp.allclose(err, 0.0, atol=1e-5), "kept elements not correctly scaled"
    drop_frac = 1.0 - jnp.mean(kept.astype(jnp.float32))
    assert 0.0 < float(drop_frac) < 0.3, f"implausible drop fraction {float(drop_frac)}"

    print("KERNEL_OK")
</pallas_src>

<mosaic_0001>
module attributes {stable_mosaic.version = 11 : i64} {
  func.func @pe_add_kernel(%arg0: i32, %arg1: memref<8x4x32xf32, #tpu.memory_space<vmem>>, %arg2: memref<8x32xf32, #tpu.memory_space<vmem>>, %arg3: memref<8x4x32xf32, #tpu.memory_space<vmem>>) attributes {dimension_semantics = [#tpu.dimension_semantics<parallel>], iteration_bounds = array<i64: 1>, scalar_prefetch = 0 : i64, scratch_operands = 0 : i64, tpu.core_type = #tpu.core_type<tc>, window_params = [{transform_indices = @transform_0, window_bounds = array<i64: 8, 4, 32>}, {transform_indices = @transform_1, window_bounds = array<i64: 8, 32>}, {transform_indices = @transform_2, window_bounds = array<i64: 8, 4, 32>}]} {
    %c0 = arith.constant 0 : index
    %c0_0 = arith.constant 0 : index
    %c0_1 = arith.constant 0 : index
    %0 = vector.load %arg1[%c0, %c0_0, %c0_1] : memref<8x4x32xf32, #tpu.memory_space<vmem>>, vector<8x4x32xf32>
    %c0_2 = arith.constant 0 : index
    %c0_3 = arith.constant 0 : index
    %1 = vector.load %arg2[%c0_2, %c0_3] : memref<8x32xf32, #tpu.memory_space<vmem>>, vector<8x32xf32>
    %2 = vector.shape_cast %1 : vector<8x32xf32> to vector<8x1x32xf32>
    %3 = vector.broadcast %2 : vector<8x1x32xf32> to vector<8x4x32xf32>
    %4 = arith.addf %0, %3 : vector<8x4x32xf32>
    %c0_4 = arith.constant 0 : index
    %c0_5 = arith.constant 0 : index
    %c0_6 = arith.constant 0 : index
    %5 = vector.load %arg3[%c0_4, %c0_5, %c0_6] : memref<8x4x32xf32, #tpu.memory_space<vmem>>, vector<8x4x32xf32>
    tpu.vector_store %arg3[%c0_4, %c0_5, %c0_6], %4 {strides = array<i32>} : memref<8x4x32xf32, #tpu.memory_space<vmem>>, vector<8x4x32xf32>,
    return
  }
  func.func @transform_0(%arg0: i32) -> (i32, i32, i32) {
    %c0_i32 = arith.constant 0 : i32
    %c0_i32_0 = arith.constant 0 : i32
    %c0_i32_1 = arith.constant 0 : i32
    return %arg0, %c0_i32, %c0_i32_0 : i32, i32, i32
  }
  func.func @transform_1(%arg0: i32) -> (i32, i32) {
    %c0_i32 = arith.constant 0 : i32
    %c0_i32_0 = arith.constant 0 : i32
    return %arg0, %c0_i32 : i32, i32
  }
  func.func @transform_2(%arg0: i32) -> (i32, i32, i32) {
    %c0_i32 = arith.constant 0 : i32
    %c0_i32_0 = arith.constant 0 : i32
    %c0_i32_1 = arith.constant 0 : i32
    return %arg0, %c0_i32, %c0_i32_0 : i32, i32, i32
  }
}

</mosaic_0001>

<bundles_post_ra>
// kernel: tpu_custom_call.1
= control target key start
LH: loop header
LB: loop body
LE: loop exit
PB: predicated region body
PF: predicated region fallthrough
CT: control target
= control target key end

     0   :  { %vm53_vm0 = vcmask 257024   ;;  %s165_s0 = inlined_call_operand.vmem [shape: f32[8,4,32], index: 0, kind: input, shape index: {}]   ;;  %s166_s1 = inlined_call_operand.vmem [shape: f32[64,32], index: 1, kind: input, shape index: {}]   ;;  %s167_s2 = inlined_call_operand.hbm [shape: f32[8,4,32], index: 2, kind: output, shape index: {}]  }
   0x1   :  { %v12_v0 = vld [vmem:[%s165_s0] sm:$0xf]  ;;  %v13_v2 = vld [vmem:[%s165_s0 + $0x4] sm:$0xf]  ;;  %v14_v5 = vld [vmem:[%s165_s0 + $0x8] sm:$0xf] }
   0x2   :  { %v20_v1 = vld [vmem:[%s166_s1] sm:$0xff]  ;;  %v15_v8 = vld [vmem:[%s165_s0 + $0xc] sm:$0xf]  ;;  %v16_v9 = vld [vmem:[%s165_s0 + $0x10] sm:$0xf] }
   0x3   :  { %v29_v3 = vperm.slane %v20_v1, 0  ;;  %v22_v4 = vrot.slane %v20_v1, 1  ;;  %v23_v6 = vrot.slane %v20_v1, 2  ;;  %v24_v7 = vrot.slane %v20_v1, 3  ;;  %v17_v16 = vld [vmem:[%s165_s0 + $0x14] sm:$0xf] }
   0x4   :  { %v25_v10 = vrot.slane %v20_v1, 4  ;;  %v26_v11 = vrot.slane %v20_v1, 5  ;;  %v27_v19 = vrot.slane %v20_v1, 6  ;;  %v28_v20 = vrot.slane %v20_v1, 7  ;;  %v18_v24 = vld [vmem:[%s165_s0 + $0x18] sm:$0xf] }
   0x5   :  { %v45_v12 = vadd.f32 %v29_v3, %v12_v0  ;;  %v30_v13 = vperm.slane %v22_v4, 0  ;;  %v31_v14 = vperm.slane %v23_v6, 0  ;;  %v32_v15 = vperm.slane %v24_v7, 0 }
   0x6   :  { %v33_v17 = vperm.slane %v25_v10, 0  ;;  %v34_v18 = vperm.slane %v26_v11, 0 }
   0x7   :  { %54 = vst.msk [vmem:[#allocation2] sm:$0xf] %vm53_vm0, %v45_v12  ;;  %v46_v21 = vadd.f32 %v30_v13, %v13_v2  ;;  %v47_v22 = vadd.f32 %v31_v14, %v14_v5  ;;  %v48_v23 = vadd.f32 %v32_v15, %v15_v8 }
   0x8   :  { %7 = vsyncpa [#allocation3], 0  ;;  %v49_v25 = vadd.f32 %v33_v17, %v16_v9  ;;  %v35_v26 = vperm.slane %v27_v19, 0  ;;  %v19_v27 = vld [vmem:[%s165_s0 + $0x1c] sm:$0xf]  ;;  %v36_v28 = vperm.slane %v28_v20, 0  ;;  %v50_v29 = vadd.f32 %v34_v18, %v17_v16 }
   0x9   :  { %55 = vst.msk [vmem:[#allocation2 + $0x4] sm:$0xf] %vm53_vm0, %v46_v21  ;;  %s109_s26 = smov [#allocation2]   ;;  %s68_s30 = sshll.u32 %s167_s2, 4  ;;  %s69_s30 = int_to_ptr.hbm [resolvable:$true] %s68_s30 }
   0xa   :  { %s66_s27 = sshll.u32 %s109_s26, 4  ;;  %56 = vst.msk [vmem:[#allocation2 + $0x8] sm:$0xf] %vm53_vm0, %v47_v22  ;;  %v51_v30 = vadd.f32 %v35_v26, %v18_v24  ;;  %v52_v31 = vadd.f32 %v36_v28, %v19_v27  ;;  %s110_s0 = smov 64   ;;  %s67_s27 = int_to_ptr.vmem [resolvable:$true] %s66_s27 }
   0xb   :  { %57 = vst.msk [vmem:[#allocation2 + $0xc] sm:$0xf] %vm53_vm0, %v48_v23  ;;  %s111_s3 = smov 4  }
   0xc   :  { %58 = vst.msk [vmem:[#allocation2 + $0x10] sm:$0xf] %vm53_vm0, %v49_v25 }
   0xd   :  { %59 = vst.msk [vmem:[#allocation2 + $0x14] sm:$0xf] %vm53_vm0, %v50_v29 }
   0xe   :  { %60 = vst.msk [vmem:[#allocation2 + $0x18] sm:$0xf] %vm53_vm0, %v51_v30 }
   0xf   :  { %61 = vst.msk [vmem:[#allocation2 + $0x1c] sm:$0xf] %vm53_vm0, %v52_v31 }
  0x10   :  { %74 = dma.vmem_to_hbm [thread:$0]  %s67_s27, 512, %s69_s30, [#allocation3], %s110_s0, %s110_s0, %s111_s3  }
  0x11   :  { %107 = dma.done.wait [#allocation3], 512  }
  0x12   :  { %108 = vsyncadd [#allocation3], 4294966784 }
  0x13   :  { %79 = vsyncpa [#allocation3], 1 }

</bundles_post_ra>
